<compile_context>
chip_gen: v6e
topology: v6e:2x2x1
jax: 0.10.0
libtpu: 0.0.40
codegen_flags: <defaults>
</compile_context>

<pallas_src>
import functools

import jax
import jax.numpy as jnp
from jax import lax
from jax.experimental import pallas as pl
from jax.experimental.pallas import tpu as pltpu

LN_EPS = 1e-5          # torch.nn.LayerNorm default eps
LANE = 128             # TPU lane width; hidden dims are padded to this
H1, H2 = 120, 84       # true hidden widths (LayerNorm stats use these)


def _round_up(x, m):
    return (x + m - 1) // m * m


def _cdiv(a, b):
    return -(-a // b)


def _layernorm_padded(h, gamma, beta, true_n):
    # h has zero pad lanes, so full-width sums equal true-feature sums.
    s = jnp.sum(h, axis=-1, keepdims=True)
    s2 = jnp.sum(h * h, axis=-1, keepdims=True)
    inv_n = 1.0 / true_n
    mu = s * inv_n
    var = jnp.maximum(s2 * inv_n - mu * mu, 0.0)
    scale = lax.rsqrt(var + LN_EPS) * gamma   # gamma folded; pad lanes have gamma=0
    return (h - mu) * scale + beta            # pad lanes -> 0 (beta pad is 0)


def qnetwork_kernel(
    x_ref,
    w1_ref, b1_ref, g1_ref, be1_ref,
    w2_ref, b2_ref, g2_ref, be2_ref,
    w3_ref, b3_ref,
    out_ref,
):
    # bf16 operands on the MXU, f32 accumulation; all elementwise math in f32.
    x = x_ref[...].astype(jnp.bfloat16)

    # ---- Linear(obs_dim, 120->128) + LayerNorm(120) + ReLU ----
    h1 = jnp.dot(x, w1_ref[...], preferred_element_type=jnp.float32) + b1_ref[...]
    h1 = jnp.maximum(_layernorm_padded(h1, g1_ref[...], be1_ref[...], H1), 0.0)

    # ---- Linear(120->128, 84->128) + LayerNorm(84) + ReLU ----
    h2 = jnp.dot(h1.astype(jnp.bfloat16), w2_ref[...],
                 preferred_element_type=jnp.float32) + b2_ref[...]
    h2 = jnp.maximum(_layernorm_padded(h2, g2_ref[...], be2_ref[...], H2), 0.0)

    # ---- Linear(84->128, n_actions) ----
    q = jnp.dot(h2.astype(jnp.bfloat16), w3_ref[...],
                preferred_element_type=jnp.float32) + b3_ref[...]

    # Store only the true action lanes -> no padded-output HBM writeback.
    n_out = out_ref.shape[-1]
    out_ref[...] = q[:, :n_out].astype(out_ref.dtype)


@functools.partial(jax.jit, static_argnames=("n_actions", "max_tile_b"))
def qnetwork_forward(x, padded_params, n_actions, max_tile_b=8192):
    """x: [B, obs_dim] f32.  padded_params: output of pad_params().
    Returns [B, n_actions] f32."""
    B, obs_dim = x.shape

    # --- batch tile selection -------------------------------------------
    # Cap the tile so the per-step working set (double-buffered x/out tiles
    # plus the three 128-lane f32 intermediates) stays well under v7x's
    # 64 MiB VMEM (and under the 48 MiB scoped limit below).
    per_row_bytes = 8 * obs_dim + 8 * n_actions + 3 * LANE * 4 + 2 * LANE * 2
    fit_rows = max(8, ((24 * 1024 * 1024) // per_row_bytes) // 8 * 8)
    tile_cap = max(8, min(max_tile_b, fit_rows))

    # >=2 grid steps whenever there is enough data, so dimension_semantics
    # ("parallel",) actually uses both v7x TensorCores; derive the tile from
    # B so batch padding waste is at most 7 rows per tile.
    min_tiles = 2 if B >= 16 else 1
    num_tiles = max(min_tiles, _cdiv(B, tile_cap))
    tile_b = _round_up(_cdiv(B, num_tiles), 8)
    b_pad = num_tiles * tile_b
    if b_pad != B:
        x = jnp.pad(x, ((0, b_pad - B), (0, 0)))

    x_spec = pl.BlockSpec((tile_b, obs_dim), lambda i: (i, 0))
    # Weights / biases / LN params: full block, constant index_map -> DMA'd
    # once, resident across all grid steps.
    param_specs = [pl.BlockSpec(p.shape, lambda i: (0, 0)) for p in padded_params]
    out_spec = pl.BlockSpec((tile_b, n_actions), lambda i: (i, 0))

    out = pl.pallas_call(
        qnetwork_kernel,
        out_shape=jax.ShapeDtypeStruct((b_pad, n_actions), jnp.float32),
        grid=(num_tiles,),
        in_specs=[x_spec] + param_specs,
        out_specs=out_spec,
        compiler_params=pltpu.CompilerParams(
            dimension_semantics=("parallel",),       # shards batch across TCs on v7x
            vmem_limit_bytes=48 * 1024 * 1024,
        ),
    )(x, *padded_params)

    if b_pad != B:
        out = out[:B]                                # only the batch slice remains
    return out


def init_params(key, obs_dim, n_actions):
    """Torch-faithful init: orthogonal(std=sqrt(2)) weights, zero biases,
    LayerNorm gamma=1 / beta=0.  Weights stored [in, out] (transpose of
    nn.Linear) so y = x @ W + b matches torch exactly."""
    k1, k2, k3 = jax.random.split(key, 3)
    ortho = jax.nn.initializers.orthogonal(scale=jnp.sqrt(2.0))
    w1 = ortho(k1, (obs_dim, H1), jnp.float32)
    b1 = jnp.zeros((H1,), jnp.float32)
    g1 = jnp.ones((H1,), jnp.float32)
    be1 = jnp.zeros((H1,), jnp.float32)
    w2 = ortho(k2, (H1, H2), jnp.float32)
    b2 = jnp.zeros((H2,), jnp.float32)
    g2 = jnp.ones((H2,), jnp.float32)
    be2 = jnp.zeros((H2,), jnp.float32)
    w3 = ortho(k3, (H2, n_actions), jnp.float32)
    b3 = jnp.zeros((n_actions,), jnp.float32)
    return (w1, b1, g1, be1, w2, b2, g2, be2, w3, b3)


def pad_params(params):
    """Zero-pad feature axes to the 128-lane width for lane-dense kernel ops.
    Weights are stored bf16 (MXU operands); biases / LN params stay f32.
    gamma/beta pads are zero, so padded LN lanes come out exactly zero."""
    (w1, b1, g1, be1, w2, b2, g2, be2, w3, b3) = params
    obs = w1.shape[0]
    n_actions = w3.shape[1]
    out_w = _round_up(max(n_actions, 1), LANE)

    def pvec(v, width=LANE):  # (F,) -> (1, width) f32
        return jnp.pad(v, (0, width - v.shape[0]))[None, :]

    def pmat(w, rows, cols):  # zero-pad then cast to bf16
        return jnp.pad(w, ((0, rows - w.shape[0]),
                           (0, cols - w.shape[1]))).astype(jnp.bfloat16)

    return (
        pmat(w1, obs, LANE), pvec(b1), pvec(g1), pvec(be1),
        pmat(w2, LANE, LANE), pvec(b2), pvec(g2), pvec(be2),
        pmat(w3, LANE, out_w), pvec(b3, out_w),
    )


def reference_forward(x, params):
    (w1, b1, g1, be1, w2, b2, g2, be2, w3, b3) = params

    def ln(h, g, b):
        mu = jnp.mean(h, axis=-1, keepdims=True)
        var = jnp.mean((h - mu) * (h - mu), axis=-1, keepdims=True)
        return (h - mu) * lax.rsqrt(var + LN_EPS) * g + b

    h = jnp.maximum(ln(x @ w1 + b1, g1, be1), 0.0)
    h = jnp.maximum(ln(h @ w2 + b2, g2, be2), 0.0)
    return h @ w3 + b3


if __name__ == "__main__":
    key = jax.random.PRNGKey(0)
    k_x, k_p = jax.random.split(key)

    batch, obs_dim, n_actions = 8, 8, 4
    x = jax.random.normal(k_x, (batch, obs_dim), dtype=jnp.float32)
    params = init_params(k_p, obs_dim, n_actions)
    padded = pad_params(params)

    out = qnetwork_forward(x, padded, n_actions)
    out = jax.block_until_ready(out)

    ref = reference_forward(x, params)
    assert out.shape == (batch, n_actions)
    # Tolerance loosened vs. the pure-f32 reference because matmul operands
    # are bf16 (f32 accumulation).
    assert jnp.allclose(out, ref, atol=5e-2, rtol=5e-2), (out, ref)

    print("KERNEL_OK")
</pallas_src>

<mosaic_0001>
module attributes {stable_mosaic.version = 11 : i64} {
  func.func @qnetwork_kernel(%arg0: i32, %arg1: memref<8x8xf32, #tpu.memory_space<vmem>>, %arg2: memref<8x128xbf16, #tpu.memory_space<vmem>>, %arg3: memref<1x128xf32, #tpu.memory_space<vmem>>, %arg4: memref<1x128xf32, #tpu.memory_space<vmem>>, %arg5: memref<1x128xf32, #tpu.memory_space<vmem>>, %arg6: memref<128x128xbf16, #tpu.memory_space<vmem>>, %arg7: memref<1x128xf32, #tpu.memory_space<vmem>>, %arg8: memref<1x128xf32, #tpu.memory_space<vmem>>, %arg9: memref<1x128xf32, #tpu.memory_space<vmem>>, %arg10: memref<128x128xbf16, #tpu.memory_space<vmem>>, %arg11: memref<1x128xf32, #tpu.memory_space<vmem>>, %arg12: memref<8x4xf32, #tpu.memory_space<vmem>>) attributes {dimension_semantics = [#tpu.dimension_semantics<parallel>], iteration_bounds = array<i64: 1>, scalar_prefetch = 0 : i64, scratch_operands = 0 : i64, tpu.core_type = #tpu.core_type<tc>, window_params = [{transform_indices = @transform_0, window_bounds = array<i64: 8, 8>}, {pipeline_mode = #tpu.pipeline_mode<synchronous>, transform_indices = @transform_1, window_bounds = array<i64: 8, 128>}, {pipeline_mode = #tpu.pipeline_mode<synchronous>, transform_indices = @transform_2, window_bounds = array<i64: 1, 128>}, {pipeline_mode = #tpu.pipeline_mode<synchronous>, transform_indices = @transform_3, window_bounds = array<i64: 1, 128>}, {pipeline_mode = #tpu.pipeline_mode<synchronous>, transform_indices = @transform_4, window_bounds = array<i64: 1, 128>}, {pipeline_mode = #tpu.pipeline_mode<synchronous>, transform_indices = @transform_5, window_bounds = array<i64: 128, 128>}, {pipeline_mode = #tpu.pipeline_mode<synchronous>, transform_indices = @transform_6, window_bounds = array<i64: 1, 128>}, {pipeline_mode = #tpu.pipeline_mode<synchronous>, transform_indices = @transform_7, window_bounds = array<i64: 1, 128>}, {pipeline_mode = #tpu.pipeline_mode<synchronous>, transform_indices = @transform_8, window_bounds = array<i64: 1, 128>}, {pipeline_mode = #tpu.pipeline_mode<synchronous>, transform_indices = @transform_9, window_bounds = array<i64: 128, 128>}, {pipeline_mode = #tpu.pipeline_mode<synchronous>, transform_indices = @transform_10, window_bounds = array<i64: 1, 128>}, {transform_indices = @transform_11, window_bounds = array<i64: 8, 4>}]} {
    %c0 = arith.constant 0 : index
    %c0_0 = arith.constant 0 : index
    %0 = vector.load %arg1[%c0, %c0_0] : memref<8x8xf32, #tpu.memory_space<vmem>>, vector<8x8xf32>
    %1 = arith.truncf %0 : vector<8x8xf32> to vector<8x8xbf16>
    %c0_1 = arith.constant 0 : index
    %c0_2 = arith.constant 0 : index
    %2 = vector.load %arg2[%c0_1, %c0_2] : memref<8x128xbf16, #tpu.memory_space<vmem>>, vector<8x128xbf16>
    %cst = arith.constant dense<0.000000e+00> : vector<8x128xf32>
    %3 = tpu.matmul %1, %2, %cst {dimension_numbers = #tpu.dot_dimension_numbers<[1], [0], [0], [1], [0, 0, 1, 1], [], []>} : vector<8x8xbf16>, vector<8x128xbf16>, vector<8x128xf32> -> vector<8x128xf32>
    %c0_3 = arith.constant 0 : index
    %c0_4 = arith.constant 0 : index
    %4 = vector.load %arg3[%c0_3, %c0_4] : memref<1x128xf32, #tpu.memory_space<vmem>>, vector<1x128xf32>
    %5 = vector.broadcast %4 : vector<1x128xf32> to vector<8x128xf32>
    %6 = arith.addf %3, %5 : vector<8x128xf32>
    %c0_5 = arith.constant 0 : index
    %c0_6 = arith.constant 0 : index
    %7 = vector.load %arg4[%c0_5, %c0_6] : memref<1x128xf32, #tpu.memory_space<vmem>>, vector<1x128xf32>
    %c0_7 = arith.constant 0 : index
    %c0_8 = arith.constant 0 : index
    %8 = vector.load %arg5[%c0_7, %c0_8] : memref<1x128xf32, #tpu.memory_space<vmem>>, vector<1x128xf32>
    %cst_9 = arith.constant dense<0.000000e+00> : vector<8xf32>
    %9 = vector.multi_reduction <add>, %6, %cst_9 [1] : vector<8x128xf32> to vector<8xf32>
    %10 = vector.shape_cast %9 : vector<8xf32> to vector<8x1xf32>
    %11 = arith.mulf %6, %6 : vector<8x128xf32>
    %cst_10 = arith.constant dense<0.000000e+00> : vector<8xf32>
    %12 = vector.multi_reduction <add>, %11, %cst_10 [1] : vector<8x128xf32> to vector<8xf32>
    %13 = vector.shape_cast %12 : vector<8xf32> to vector<8x1xf32>
    %cst_11 = arith.constant 0.00833333377 : f32
    %14 = vector.broadcast %cst_11 : f32 to vector<8x1xf32>
    %15 = arith.mulf %10, %14 : vector<8x1xf32>
    %cst_12 = arith.constant 0.00833333377 : f32
    %16 = vector.broadcast %cst_12 : f32 to vector<8x1xf32>
    %17 = arith.mulf %13, %16 : vector<8x1xf32>
    %18 = arith.mulf %15, %15 : vector<8x1xf32>
    %19 = arith.subf %17, %18 : vector<8x1xf32>
    %cst_13 = arith.constant 0.000000e+00 : f32
    %20 = vector.broadcast %cst_13 : f32 to vector<8x1xf32>
    %21 = arith.maximumf %19, %20 : vector<8x1xf32>
    %cst_14 = arith.constant 9.99999974E-6 : f32
    %22 = vector.broadcast %cst_14 : f32 to vector<8x1xf32>
    %23 = arith.addf %21, %22 : vector<8x1xf32>
    %24 = math.rsqrt %23 : vector<8x1xf32>
    %25 = vector.broadcast %24 : vector<8x1xf32> to vector<8x128xf32>
    %26 = vector.broadcast %7 : vector<1x128xf32> to vector<8x128xf32>
    %27 = arith.mulf %25, %26 : vector<8x128xf32>
    %28 = vector.broadcast %15 : vector<8x1xf32> to vector<8x128xf32>
    %29 = arith.subf %6, %28 : vector<8x128xf32>
    %30 = arith.mulf %29, %27 : vector<8x128xf32>
    %31 = vector.broadcast %8 : vector<1x128xf32> to vector<8x128xf32>
    %32 = arith.addf %30, %31 : vector<8x128xf32>
    %cst_15 = arith.constant 0.000000e+00 : f32
    %33 = vector.broadcast %cst_15 : f32 to vector<8x128xf32>
    %34 = arith.maximumf %32, %33 : vector<8x128xf32>
    %35 = arith.truncf %34 : vector<8x128xf32> to vector<8x128xbf16>
    %c0_16 = arith.constant 0 : index
    %c0_17 = arith.constant 0 : index
    %36 = vector.load %arg6[%c0_16, %c0_17] : memref<128x128xbf16, #tpu.memory_space<vmem>>, vector<128x128xbf16>
    %cst_18 = arith.constant dense<0.000000e+00> : vector<8x128xf32>
    %37 = tpu.matmul %35, %36, %cst_18 {dimension_numbers = #tpu.dot_dimension_numbers<[1], [0], [0], [1], [0, 0, 1, 1], [], []>} : vector<8x128xbf16>, vector<128x128xbf16>, vector<8x128xf32> -> vector<8x128xf32>
    %c0_19 = arith.constant 0 : index
    %c0_20 = arith.constant 0 : index
    %38 = vector.load %arg7[%c0_19, %c0_20] : memref<1x128xf32, #tpu.memory_space<vmem>>, vector<1x128xf32>
    %39 = vector.broadcast %38 : vector<1x128xf32> to vector<8x128xf32>
    %40 = arith.addf %37, %39 : vector<8x128xf32>
    %c0_21 = arith.constant 0 : index
    %c0_22 = arith.constant 0 : index
    %41 = vector.load %arg8[%c0_21, %c0_22] : memref<1x128xf32, #tpu.memory_space<vmem>>, vector<1x128xf32>
    %c0_23 = arith.constant 0 : index
    %c0_24 = arith.constant 0 : index
    %42 = vector.load %arg9[%c0_23, %c0_24] : memref<1x128xf32, #tpu.memory_space<vmem>>, vector<1x128xf32>
    %cst_25 = arith.constant dense<0.000000e+00> : vector<8xf32>
    %43 = vector.multi_reduction <add>, %40, %cst_25 [1] : vector<8x128xf32> to vector<8xf32>
    %44 = vector.shape_cast %43 : vector<8xf32> to vector<8x1xf32>
    %45 = arith.mulf %40, %40 : vector<8x128xf32>
    %cst_26 = arith.constant dense<0.000000e+00> : vector<8xf32>
    %46 = vector.multi_reduction <add>, %45, %cst_26 [1] : vector<8x128xf32> to vector<8xf32>
    %47 = vector.shape_cast %46 : vector<8xf32> to vector<8x1xf32>
    %cst_27 = arith.constant 0.0119047621 : f32
    %48 = vector.broadcast %cst_27 : f32 to vector<8x1xf32>
    %49 = arith.mulf %44, %48 : vector<8x1xf32>
    %cst_28 = arith.constant 0.0119047621 : f32
    %50 = vector.broadcast %cst_28 : f32 to vector<8x1xf32>
    %51 = arith.mulf %47, %50 : vector<8x1xf32>
    %52 = arith.mulf %49, %49 : vector<8x1xf32>
    %53 = arith.subf %51, %52 : vector<8x1xf32>
    %cst_29 = arith.constant 0.000000e+00 : f32
    %54 = vector.broadcast %cst_29 : f32 to vector<8x1xf32>
    %55 = arith.maximumf %53, %54 : vector<8x1xf32>
    %cst_30 = arith.constant 9.99999974E-6 : f32
    %56 = vector.broadcast %cst_30 : f32 to vector<8x1xf32>
    %57 = arith.addf %55, %56 : vector<8x1xf32>
    %58 = math.rsqrt %57 : vector<8x1xf32>
    %59 = vector.broadcast %58 : vector<8x1xf32> to vector<8x128xf32>
    %60 = vector.broadcast %41 : vector<1x128xf32> to vector<8x128xf32>
    %61 = arith.mulf %59, %60 : vector<8x128xf32>
    %62 = vector.broadcast %49 : vector<8x1xf32> to vector<8x128xf32>
    %63 = arith.subf %40, %62 : vector<8x128xf32>
    %64 = arith.mulf %63, %61 : vector<8x128xf32>
    %65 = vector.broadcast %42 : vector<1x128xf32> to vector<8x128xf32>
    %66 = arith.addf %64, %65 : vector<8x128xf32>
    %cst_31 = arith.constant 0.000000e+00 : f32
    %67 = vector.broadcast %cst_31 : f32 to vector<8x128xf32>
    %68 = arith.maximumf %66, %67 : vector<8x128xf32>
    %69 = arith.truncf %68 : vector<8x128xf32> to vector<8x128xbf16>
    %c0_32 = arith.constant 0 : index
    %c0_33 = arith.constant 0 : index
    %70 = vector.load %arg10[%c0_32, %c0_33] : memref<128x128xbf16, #tpu.memory_space<vmem>>, vector<128x128xbf16>
    %cst_34 = arith.constant dense<0.000000e+00> : vector<8x128xf32>
    %71 = tpu.matmul %69, %70, %cst_34 {dimension_numbers = #tpu.dot_dimension_numbers<[1], [0], [0], [1], [0, 0, 1, 1], [], []>} : vector<8x128xbf16>, vector<128x128xbf16>, vector<8x128xf32> -> vector<8x128xf32>
    %c0_35 = arith.constant 0 : index
    %c0_36 = arith.constant 0 : index
    %72 = vector.load %arg11[%c0_35, %c0_36] : memref<1x128xf32, #tpu.memory_space<vmem>>, vector<1x128xf32>
    %73 = vector.broadcast %72 : vector<1x128xf32> to vector<8x128xf32>
    %74 = arith.addf %71, %73 : vector<8x128xf32>
    %75 = vector.extract_strided_slice %74 {offsets = [0, 0], sizes = [8, 4], strides = [1, 1]} : vector<8x128xf32> to vector<8x4xf32>
    %c0_37 = arith.constant 0 : index
    %c0_38 = arith.constant 0 : index
    %76 = vector.load %arg12[%c0_37, %c0_38] : memref<8x4xf32, #tpu.memory_space<vmem>>, vector<8x4xf32>
    tpu.vector_store %arg12[%c0_37, %c0_38], %75 {strides = array<i32>} : memref<8x4xf32, #tpu.memory_space<vmem>>, vector<8x4xf32>,
    return
  }
  func.func @transform_0(%arg0: i32) -> (i32, i32) {
    %c0_i32 = arith.constant 0 : i32
    %c0_i32_0 = arith.constant 0 : i32
    return %arg0, %c0_i32 : i32, i32
  }
  func.func @transform_1(%arg0: i32) -> (i32, i32) {
    %c0_i32 = arith.constant 0 : i32
    %c0_i32_0 = arith.constant 0 : i32
    %c0_i32_1 = arith.constant 0 : i32
    return %c0_i32, %c0_i32_0 : i32, i32
  }
  func.func @transform_2(%arg0: i32) -> (i32, i32) {
    %c0_i32 = arith.constant 0 : i32
    %c0_i32_0 = arith.constant 0 : i32
    %c0_i32_1 = arith.constant 0 : i32
    return %c0_i32, %c0_i32_0 : i32, i32
  }
  func.func @transform_3(%arg0: i32) -> (i32, i32) {
    %c0_i32 = arith.constant 0 : i32
    %c0_i32_0 = arith.constant 0 : i32
    %c0_i32_1 = arith.constant 0 : i32
    return %c0_i32, %c0_i32_0 : i32, i32
  }
  func.func @transform_4(%arg0: i32) -> (i32, i32) {
    %c0_i32 = arith.constant 0 : i32
    %c0_i32_0 = arith.constant 0 : i32
    %c0_i32_1 = arith.constant 0 : i32
    return %c0_i32, %c0_i32_0 : i32, i32
  }
  func.func @transform_5(%arg0: i32) -> (i32, i32) {
    %c0_i32 = arith.constant 0 : i32
    %c0_i32_0 = arith.constant 0 : i32
    %c0_i32_1 = arith.constant 0 : i32
    return %c0_i32, %c0_i32_0 : i32, i32
  }
  func.func @transform_6(%arg0: i32) -> (i32, i32) {
    %c0_i32 = arith.constant 0 : i32
    %c0_i32_0 = arith.constant 0 : i32
    %c0_i32_1 = arith.constant 0 : i32
    return %c0_i32, %c0_i32_0 : i32, i32
  }
  func.func @transform_7(%arg0: i32) -> (i32, i32) {
    %c0_i32 = arith.constant 0 : i32
    %c0_i32_0 = arith.constant 0 : i32
    %c0_i32_1 = arith.constant 0 : i32
    return %c0_i32, %c0_i32_0 : i32, i32
  }
  func.func @transform_8(%arg0: i32) -> (i32, i32) {
    %c0_i32 = arith.constant 0 : i32
    %c0_i32_0 = arith.constant 0 : i32
    %c0_i32_1 = arith.constant 0 : i32
    return %c0_i32, %c0_i32_0 : i32, i32
  }
  func.func @transform_9(%arg0: i32) -> (i32, i32) {
    %c0_i32 = arith.constant 0 : i32
    %c0_i32_0 = arith.constant 0 : i32
    %c0_i32_1 = arith.constant 0 : i32
    return %c0_i32, %c0_i32_0 : i32, i32
  }
  func.func @transform_10(%arg0: i32) -> (i32, i32) {
    %c0_i32 = arith.constant 0 : i32
    %c0_i32_0 = arith.constant 0 : i32
    %c0_i32_1 = arith.constant 0 : i32
    return %c0_i32, %c0_i32_0 : i32, i32
  }
  func.func @transform_11(%arg0: i32) -> (i32, i32) {
    %c0_i32 = arith.constant 0 : i32
    %c0_i32_0 = arith.constant 0 : i32
    return %arg0, %c0_i32 : i32, i32
  }
}

</mosaic_0001>

<bundles_post_ra>
// kernel: qnetwork_forward.1
= control target key start
LH: loop header
LB: loop body
LE: loop exit
PB: predicated region body
PF: predicated region fallthrough
CT: control target
= control target key end

     0   :  { %16 = vsyncpa [#allocation3], 0  ;;  %s771_s0 = inlined_call_operand.hbm [shape: f32[8,8], index: 0, kind: input, shape index: {}]   ;;  %s772_s1 = inlined_call_operand.hbm [shape: bf16[8,128], index: 1, kind: input, shape index: {}]   ;;  %s773_s2 = inlined_call_operand.vmem [shape: f32[1,128], index: 2, kind: input, shape index: {}]   ;;  %s774_s3 = inlined_call_operand.vmem [shape: f32[1,128], index: 3, kind: input, shape index: {}]   ;;  %s775_s4 = inlined_call_operand.vmem [shape: f32[1,128], index: 4, kind: input, shape index: {}]   ;;  %s776_s5 = inlined_call_operand.hbm [shape: bf16[128,128], index: 5, kind: input, shape index: {}]   ;;  %s777_s6 = inlined_call_operand.vmem [shape: f32[1,128], index: 6, kind: input, shape index: {}]   ;;  %s778_s7 = inlined_call_operand.vmem [shape: f32[1,128], index: 7, kind: input, shape index: {}]   ;;  %s779_s8 = inlined_call_operand.vmem [shape: f32[1,128], index: 8, kind: input, shape index: {}]   ;;  %s780_s9 = inlined_call_operand.hbm [shape: bf16[128,128], index: 9, kind: input, shape index: {}]   ;;  %s781_s10 = inlined_call_operand.vmem [shape: f32[1,128], index: 10, kind: input, shape index: {}]   ;;  %s782_s11 = inlined_call_operand.vmem [shape: f32[8,4], index: 11, kind: output, shape index: {}]  }
   0x1   :  { %17 = vsyncpa [#allocation5], 0 }
   0x2   :  { %18 = vsyncpa [#allocation8], 0  ;;  %s647_s17 = smov [#allocation4]   ;;  %s648_s19 = smov [#allocation2]  }
   0x3   :  { %s35_s18 = sshll.u32 %s647_s17, 4  ;;  %s25_s20 = sshll.u32 %s648_s19, 4  ;;  %s36_s18 = int_to_ptr.vmem [resolvable:$true] %s35_s18  ;;  %s26_s20 = int_to_ptr.vmem [resolvable:$true] %s25_s20 }
   0x4   :  { %s569_s21 = scalar_lea.vmem %s36_s18, 64  ;;  %p574_p1 = scmp.lt.s32.totalorder %s36_s18, %s36_s18 }
   0x5   :  { %p570_p0 = scmp.ne.s32.totalorder %s36_s18, %s569_s21  ;;  %p575_p2 = scmp.lt.s32.totalorder %s569_s21, %s569_s21 }
   0x7   :  { %p576_p3 = por %p575_p2, %p574_p1 }
   0x9   :  { %p577_p4 = pnand %p576_p3, %p570_p0 }
   0xb   :  { %580 = shalt.err (!%p577_p4)
}
   0xc   :  { %38 = dma.hbm_to_vmem [thread:$0]  %s772_s1, 64, %s36_s18, [#allocation5]  }
   0xd   :  { %s589_s24 = scalar_lea.vmem %s26_s20, 128  ;;  %p594_p6 = scmp.lt.s32.totalorder %s26_s20, %s26_s20 }
   0xe   :  { %p590_p5 = scmp.ne.s32.totalorder %s26_s20, %s589_s24  ;;  %p595_p7 = scmp.lt.s32.totalorder %s589_s24, %s589_s24 }
  0x10   :  { %p596_p8 = por %p595_p7, %p594_p6 }
  0x12   :  { %p597_p9 = pnand %p596_p8, %p590_p5 }
  0x14   :  { %600 = shalt.err (!%p597_p9)
}
  0x15   :  { %28 = dma.hbm_to_vmem [thread:$0]  %s771_s0, 128, %s26_s20, [#allocation3]  }
  0x16   :  { %s649_s27 = smov [#allocation6]  }
  0x17   :  { %s50_s28 = sshll.u32 %s649_s27, 4  ;;  %s51_s28 = int_to_ptr.vmem [resolvable:$true] %s50_s28 }
  0x18   :  { %s609_s29 = scalar_lea.vmem %s51_s28, 1024  ;;  %p614_p11 = scmp.lt.s32.totalorder %s51_s28, %s51_s28 }
  0x19   :  { %p610_p10 = scmp.ne.s32.totalorder %s51_s28, %s609_s29  ;;  %p615_p12 = scmp.lt.s32.totalorder %s609_s29, %s609_s29 }
  0x1b   :  { %p616_p13 = por %p615_p12, %p614_p11 }
  0x1d   :  { %p617_p0 = pnand %p616_p13, %p610_p10 }
  0x1f   :  { %620 = shalt.err (!%p617_p0)
}
  0x20   :  { %s650_s1 = smov 64   ;;  %s651_s30 = smov 4  }
  0x21   :  { %56 = dma.hbm_to_vmem [thread:$0]  %s776_s5, 1024, %s51_s28, [#allocation5], %s650_s1, %s650_s1, %s651_s30  }
  0x22   :  { %s652_s14 = smov [#allocation7]  }
  0x23   :  { %s68_s15 = sshll.u32 %s652_s14, 4  ;;  %s69_s15 = int_to_ptr.vmem [resolvable:$true] %s68_s15 }
  0x24   :  { %s629_s0 = scalar_lea.vmem %s69_s15, 1024  ;;  %p634_p2 = scmp.lt.s32.totalorder %s69_s15, %s69_s15 }
  0x25   :  { %p630_p1 = scmp.ne.s32.totalorder %s69_s15, %s629_s0  ;;  %p635_p3 = scmp.lt.s32.totalorder %s629_s0, %s629_s0 }
  0x27   :  { %p636_p4 = por %p635_p3, %p634_p2 }
  0x29   :  { %p637_p5 = pnand %p636_p4, %p630_p1 }
  0x2b   :  { %640 = shalt.err (!%p637_p5)
}
  0x2c   :  { %74 = dma.hbm_to_vmem [thread:$0]  %s780_s9, 1024, %s69_s15, [#allocation8], %s650_s1, %s650_s1, %s651_s30  }
  0x2d   :  { %641 = dma.done.wait [#allocation3], 128  }
  0x2e   :  { %642 = vsyncadd [#allocation3], 4294967168 }
  0x2f   :  { %643 = dma.done.wait [#allocation5], 1088  }
  0x30   :  { %644 = vsyncadd [#allocation5], 4294966208 }
  0x31   :  { %645 = dma.done.wait [#allocation8], 1024  }
  0x32   :  { %646 = vsyncadd [#allocation8], 4294966272  ;;  %v653_v0 = vmov 0.0   ;;  %vm654_vm0 = vmmov 0   ;;  %vm104_vm1 = vcmask 1043456   ;;  %v90_v2 = vld [vmem:[#allocation2] sm:$0xff] }
  0x33   :  { %487 = vmatprep.subr.bf16.mxu0 %v653_v0  ;;  %489 = vmatprep.mubr.msk.bf16.mxu0 %vm654_vm0, %v653_v0  ;;  %v92_v1 = vld [vmem:[#allocation4] sm:$0xf]  ;;  %v91_v4 = vpack.c.bf16 %v90_v2, %v90_v2  ;;  %vm100_vm2 = vcmask 64512   ;;  %v443_v5 = vld [vmem:[%s773_s2] ss:$0 sm:$0xff]  ;;  %v543_v14 = vld [vmem:[#allocation6 + $0x28] sm:$0xff]  }
  0x34   :  { %493 = vmatprep.subr.bf16.mxu1 %v653_v0  ;;  %509 = vmatprep.mubr.msk.bf16.mxu1 %vm654_vm0, %v653_v0  ;;  %v106_v3 = vsel %vm104_vm1, %v92_v1, 0  ;;  %v541_v12 = vld [vmem:[#allocation6 + $0x38] sm:$0xff]   ;;  %v542_v13 = vld [vmem:[#allocation6 + $0x30] sm:$0xff]   ;;  %v544_v15 = vld [vmem:[#allocation6 + $0x20] sm:$0xff]   ;;  %vm434_vm3 = vcmask 31744  }
  0x35   :  { %488 = vmatpush3.bf16.msra.mxu0 %v106_v3  ;;  %494 = vmatpush3.bf16.msra.mxu1 %v541_v12  ;;  %v545_v16 = vld [vmem:[#allocation6 + $0x18] sm:$0xff]   ;;  %v546_v17 = vld [vmem:[#allocation6 + $0x10] sm:$0xff]   ;;  %v547_v18 = vld [vmem:[#allocation6 + $0x8] sm:$0xff]  }
  0x36   :  { %513 = vmatprep.subr.bf16.mxu0 %v653_v0  ;;  %495 = vmatprep.subr.bf16.mxu1 %v653_v0  ;;  %v548_v19 = vld [vmem:[#allocation6] sm:$0xff]   ;;  %v445_v28 = vld [vmem:[%s774_s3] ss:$0 sm:$0xff]  ;;  %v549_v44 = vld [vmem:[#allocation7 + $0x38] sm:$0xff]  }
  0x37   :  { %v446_v32 = vld [vmem:[%s775_s4] ss:$0 sm:$0xff]  ;;  %v551_v46 = vld [vmem:[#allocation7 + $0x28] sm:$0xff]   ;;  %v552_v47 = vld [vmem:[#allocation7 + $0x20] sm:$0xff]  }
  0x38   :  { %490 = vmatmul.mubr.msk.bf16.vlgmr.msra.gmra.mxu0 %vm100_vm2, %v91_v4  ;;  %v447_v37 = vld [vmem:[%s777_s6] ss:$0 sm:$0xff]  ;;  %v553_v48 = vld [vmem:[#allocation7 + $0x18] sm:$0xff]   ;;  %v555_v50 = vld [vmem:[#allocation7 + $0x8] sm:$0xff]  }
  0x39   :  { %529 = vmatprep.mubr.msk.bf16.mxu0 %vm654_vm0, %v653_v0  ;;  %496 = vmatpush3.bf16.msra.mxu1 %v542_v13  ;;  %v550_v45 = vld [vmem:[#allocation7 + $0x30] sm:$0xff]   ;;  %v556_v51 = vld [vmem:[#allocation7] sm:$0xff]  }
  0x3a   :  { %497 = vmatprep.subr.bf16.mxu1 %v653_v0  ;;  %514 = vmatpush3.bf16.msra.mxu0 %v549_v44  ;;  %v554_v49 = vld [vmem:[#allocation7 + $0x10] sm:$0xff]  }
  0x3b   :  { %515 = vmatprep.subr.bf16.mxu0 %v653_v0  ;;  %v456_v60 = vld [vmem:[%s778_s7] ss:$0 sm:$0xff] }
  0x3d   :  { %498 = vmatpush3.bf16.msra.mxu1 %v543_v14 }
  0x3e   :  { %499 = vmatprep.subr.bf16.mxu1 %v653_v0  ;;  %516 = vmatpush3.bf16.msra.mxu0 %v550_v45 }
  0x3f   :  { %517 = vmatprep.subr.bf16.mxu0 %v653_v0 }
  0x41   :  { %500 = vmatpush3.bf16.msra.mxu1 %v544_v15 }
  0x42   :  { %501 = vmatprep.subr.bf16.mxu1 %v653_v0  ;;  %518 = vmatpush3.bf16.msra.mxu0 %v551_v46 }
  0x43   :  { %519 = vmatprep.subr.bf16.mxu0 %v653_v0 }
  0x45   :  { %502 = vmatpush3.bf16.msra.mxu1 %v545_v16 }
  0x46   :  { %503 = vmatprep.subr.bf16.mxu1 %v653_v0  ;;  %520 = vmatpush3.bf16.msra.mxu0 %v552_v47 }
  0x47   :  { %521 = vmatprep.subr.bf16.mxu0 %v653_v0 }
  0x49   :  { %504 = vmatpush3.bf16.msra.mxu1 %v546_v17 }
  0x4a   :  { %505 = vmatprep.subr.bf16.mxu1 %v653_v0  ;;  %522 = vmatpush3.bf16.msra.mxu0 %v553_v48 }
  0x4b   :  { %523 = vmatprep.subr.bf16.mxu0 %v653_v0 }
  0x4d   :  { %506 = vmatpush3.bf16.msra.mxu1 %v547_v18 }
  0x4e   :  { %507 = vmatprep.subr.bf16.mxu1 %v653_v0  ;;  %524 = vmatpush3.bf16.msra.mxu0 %v554_v49 }
  0x4f   :  { %525 = vmatprep.subr.bf16.mxu0 %v653_v0 }
  0x51   :  { %508 = vmatpush3.bf16.msra.mxu1 %v548_v19 }
  0x52   :  { %526 = vmatpush3.bf16.msra.mxu0 %v555_v50 }
  0x53   :  { %527 = vmatprep.subr.bf16.mxu0 %v653_v0  ;;  %v457_v0 = vld [vmem:[%s779_s8] ss:$0 sm:$0xff] }
  0x56   :  { %528 = vmatpush3.bf16.msra.mxu0 %v556_v51 }
  0xf8   :  { %v142_v6 = vpop.f32.mrf.mxu0 }
  0xf9   :  { %v143_v7 = vadd.f32 %v443_v5, %v142_v6  ;;  %v458_v5 = vld [vmem:[%s781_s10] ss:$0 sm:$0xff] }
  0xfa   :  { %v491_v8 = vpop.f32.mrf.mxu0 }
  0xfb   :  { %150 = vadd.xlane.f32.xlu0 %v143_v7  ;;  %v152_v10 = vmul.f32 %v143_v7, %v143_v7 }
  0xfc   :  { %v145_v9 = vpop.f32.mrf.mxu0 }
  0xfe   :  { %v492_v11 = vpop.f32.mrf.mxu0 }
  0xff   :  { %153 = vadd.xlane.f32.xlu0 %v152_v10 }
 0x184   :  { %v151_v20 = vpop.xlane.xlu0 %150 }
 0x185   :  { %v155_v21 = vmul.f32 0.008333334, %v151_v20 }
 0x187   :  { %v157_v23 = vmul.f32 %v155_v21, %v155_v21  ;;  %v169_v30 = vsub.f32 %v143_v7, %v155_v21 }
 0x188   :  { %v154_v22 = vpop.xlane.xlu0 %153 }
 0x189   :  { %v156_v24 = vmul.f32 0.008333334, %v154_v22 }
 0x18b   :  { %v158_v25 = vsub.f32 %v156_v24, %v157_v23 }
 0x18d   :  { %v159_v26 = vmax.f32 %v158_v25, 0.0 }
 0x18f   :  { %v160_v27 = vadd.f32 1e-05, %v159_v26 }
 0x191   :  { %557 = vrsqrt.f32 %v160_v27 }
 0x19e   :  { %v558_v29 = vpop.eup %557 }
 0x19f   :  { %v168_v31 = vmul.f32 %v558_v29, %v445_v28 }
 0x1a1   :  { %v170_v33 = vmul.f32 %v169_v30, %v168_v31 }
 0x1a3   :  { %v177_v34 = vadd.f32 %v446_v32, %v170_v33 }
 0x1a5   :  { %v178_v35 = vmax.f32 %v177_v34, 0.0 }
 0x1a7   :  { %v179_v36 = vpack.c.bf16 %v178_v35, %v178_v35 }
 0x1a9   :  { %510 = vmatmul.mubr.bf16.vlgmr.msra.gmra.mxu1 %v179_v36 }
 0x269   :  { %v285_v38 = vpop.f32.mrf.mxu1 }
 0x26a   :  { %v286_v39 = vadd.f32 %v447_v37, %v285_v38 }
 0x26b   :  { %v511_v40 = vpop.f32.mrf.mxu1 }
 0x26c   :  { %293 = vadd.xlane.f32.xlu1 %v286_v39  ;;  %v295_v42 = vmul.f32 %v286_v39, %v286_v39 }
 0x26d   :  { %v288_v41 = vpop.f32.mrf.mxu1 }
 0x26f   :  { %v512_v43 = vpop.f32.mrf.mxu1 }
 0x270   :  { %296 = vadd.xlane.f32.xlu1 %v295_v42 }
 0x2f5   :  { %v294_v52 = vpop.xlane.xlu1 %293 }
 0x2f6   :  { %v298_v53 = vmul.f32 0.011904762, %v294_v52 }
 0x2f8   :  { %v300_v55 = vmul.f32 %v298_v53, %v298_v53  ;;  %v312_v62 = vsub.f32 %v286_v39, %v298_v53 }
 0x2f9   :  { %v297_v54 = vpop.xlane.xlu1 %296 }
 0x2fa   :  { %v299_v56 = vmul.f32 0.011904762, %v297_v54 }
 0x2fc   :  { %v301_v57 = vsub.f32 %v299_v56, %v300_v55 }
 0x2fe   :  { %v302_v58 = vmax.f32 %v301_v57, 0.0 }
 0x300   :  { %v303_v59 = vadd.f32 1e-05, %v302_v58 }
 0x302   :  { %559 = vrsqrt.f32 %v303_v59 }
 0x30f   :  { %v560_v61 = vpop.eup %559 }
 0x310   :  { %v311_v63 = vmul.f32 %v560_v61, %v456_v60 }
 0x312   :  { %v313_v1 = vmul.f32 %v312_v62, %v311_v63 }
 0x314   :  { %v320_v2 = vadd.f32 %v457_v0, %v313_v1 }
 0x316   :  { %v321_v3 = vmax.f32 %v320_v2, 0.0 }
 0x318   :  { %v322_v4 = vpack.c.bf16 %v321_v3, %v321_v3 }
 0x31a   :  { %530 = vmatmul.mubr.bf16.vlgmr.msra.gmra.mxu0 %v322_v4 }
 0x3da   :  { %v428_v6 = vpop.f32.mrf.mxu0 }
 0x3db   :  { %v429_v7 = vadd.f32 %v458_v5, %v428_v6 }
 0x3dc   :  { %v531_v8 = vpop.f32.mrf.mxu0 }
 0x3dd   :  { %435 = vst.msk [vmem:[%s782_s11] sm:$0xff] %vm434_vm3, %v429_v7 }
 0x3de   :  { %v431_v9 = vpop.f32.mrf.mxu0 }
 0x3e0   :  { %v532_v10 = vpop.f32.mrf.mxu0 }
 0x3e1   :  { %440 = vsyncpa [#allocation3], 1 }
 0x3e2   :  { %441 = vsyncpa [#allocation5], 1 }
 0x3e3   :  { %442 = vsyncpa [#allocation8], 1 }

</bundles_post_ra>
